<compile_context>
chip_gen: v6e
topology: v6e:2x2x1
jax: 0.10.0
libtpu: 0.0.40
codegen_flags: <defaults>
</compile_context>

<pallas_src>
import jax
import jax.numpy as jnp
from jax.experimental import pallas as pl
from jax.experimental.pallas import tpu as pltpu


# ----------------------------------------------------------------------------- kernel
def _weigth1d_kernel(x_ref, w_ref, o_ref):
    # x_ref: (1, N, TC, TT)  one batch element, all N inputs, one (C, T) tile
    # w_ref: (TC, N)         softmax-ed weights (f32), resident / C-tiled block
    # o_ref: (1, TC, TT)
    n_inputs = x_ref.shape[1]
    w = w_ref[...]                                           # (TC, N) f32

    # Unrolled accumulate over N (N is 2-4): one input slice + one f32 accumulator
    # live at a time; per-slice upcast handles bf16 inputs. Weight column (TC, 1)
    # broadcasts along lanes for free.
    acc = x_ref[0, 0].astype(jnp.float32) * w[:, 0:1]        # (TC, TT)
    for n in range(1, n_inputs):
        acc = acc + x_ref[0, n].astype(jnp.float32) * w[:, n:n + 1]

    o_ref[...] = acc[None, :, :].astype(o_ref.dtype)


# --------------------------------------------------------------------- sizing helpers
def _vmem_defaults():
    """(tile_budget_bytes, vmem_limit_cap_bytes) tuned per TPU generation."""
    try:
        cap = pltpu.get_tpu_info().vmem_capacity_bytes
    except Exception:
        cap = 64 * 1024 * 1024                       # conservative: assume v7x-sized VMEM
    if cap >= 96 * 1024 * 1024:                      # v5e / v6e: 128 MiB physical VMEM
        return 48 * 1024 * 1024, 96 * 1024 * 1024
    else:                                            # v7x: 64 MiB per TensorCore
        return 24 * 1024 * 1024, 44 * 1024 * 1024


def _largest_aligned_divisor(total, cap, quantum):
    """Largest multiple-of-`quantum` divisor of `total` (itself a multiple of
    `quantum`) that is <= cap; at least `quantum`."""
    cap = max(quantum, (cap // quantum) * quantum)
    t = min(total, cap)
    t = max(quantum, (t // quantum) * quantum)
    while t > quantum and total % t != 0:
        t -= quantum
    return t


def _plan_tiles(B, N, C, T, in_itemsize, out_itemsize, budget_bytes):
    """Choose (TC, TT, padded_T).  Accounts for double-buffered in/out blocks,
    the resident weight block AND the in-kernel f32 accumulator/upcast scratch."""
    w_bytes = 2 * C * N * 4                          # (C, N) f32 weight block (2 bufs)

    def per_t(tc):
        # bytes per unit of T: 2 input bufs + 2 output bufs + f32 acc + f32 upcast slice
        return 2 * N * tc * in_itemsize + 2 * tc * out_itemsize + 2 * tc * 4

    # ---- time extent: pad unaligned T to a multiple of 128 unless trivially small
    if T % 128 == 0:
        pad_T = T
    elif per_t(C) * T + w_bytes <= budget_bytes:
        pad_T = T                                    # tiny unaligned T: one full block
    else:
        pad_T = ((T + 127) // 128) * 128             # wrapper pads, output sliced back

    tc = C
    if pad_T % 128 != 0:
        tt = pad_T                                   # full-extent time block (small)
    else:
        avail = max(budget_bytes - w_bytes, per_t(tc) * 128)
        tt = _largest_aligned_divisor(pad_T, avail // per_t(tc), 128)
        # Large-C escape hatch: keep output lane width >= 512 by tiling C instead of
        # collapsing TT (wide unmasked vst + long contiguous DMA rows).
        target_tt = min(512, pad_T)
        if tt < target_tt and C % 8 == 0 and C > 8:
            for tc_cand in range(C - 8, 7, -8):
                if C % tc_cand != 0:
                    continue
                tt_cand = _largest_aligned_divisor(
                    pad_T, avail // per_t(tc_cand), 128)
                if tt_cand > tt:
                    tc, tt = tc_cand, tt_cand
                if tt >= target_tt:
                    break

    # ---- guarantee >= 2 grid steps so both v7x TensorCores stream
    steps = B * (C // tc) * (pad_T // tt)
    if steps < 2:
        if pad_T % 128 == 0 and tt >= 256:
            tt //= 2                                 # still a multiple-of-128 divisor
        elif tc % 16 == 0:
            tc //= 2                                 # still a multiple of 8
        # else: degenerate tiny problem; a single step is fine.

    return tc, tt, pad_T


# --------------------------------------------------------------------------- wrapper
def weigth1d_forward(xs_stacked, w, *, time_tile=None, vmem_budget_bytes=None):
    """xs_stacked: (B, N, C, T) — the N list entries stacked along axis 1.
       w:          (N, C) or the PyTorch parameter shape (1, N, C, 1).
       returns:    (B, C, T)
    """
    B, N, C, T = xs_stacked.shape
    if w.ndim != 2:                                  # accept the raw (1, N, C, 1) param
        w = jnp.reshape(w, (N, C))
    assert w.shape == (N, C)

    # Softmax over N is a tiny (N, C) op: compute ONCE here, not per grid step.
    sm_t = jax.nn.softmax(w.astype(jnp.float32), axis=0).T   # (C, N), lane-broadcast friendly

    in_item = jnp.dtype(xs_stacked.dtype).itemsize
    out_item = in_item

    budget, limit_cap = _vmem_defaults()
    if vmem_budget_bytes is not None:
        budget = vmem_budget_bytes

    tc, tt, pad_T = _plan_tiles(B, N, C, T, in_item, out_item, budget)
    if time_tile is not None:                        # explicit override (tests / tuning)
        assert pad_T % time_tile == 0 and (time_tile % 128 == 0 or time_tile == pad_T)
        tt = time_tile

    x = xs_stacked
    if pad_T != T:
        x = jnp.pad(x, ((0, 0), (0, 0), (0, 0), (0, pad_T - T)))

    # Derive vmem_limit from the actual per-step footprint (+~30% headroom),
    # capped per generation (never past ~44 MiB on v7x's 64 MiB VMEM).
    footprint = (2 * N * tc * tt * in_item           # double-buffered input blocks
                 + 2 * tc * tt * out_item            # double-buffered output blocks
                 + 2 * C * N * 4                     # weight block
                 + 2 * tc * tt * 4)                  # in-kernel f32 acc + upcast slice
    vmem_limit = int(min(limit_cap, max(32 * 1024 * 1024, footprint * 1.3)))

    grid = (B, C // tc, pad_T // tt)

    out = pl.pallas_call(
        _weigth1d_kernel,
        out_shape=jax.ShapeDtypeStruct((B, C, pad_T), xs_stacked.dtype),
        grid_spec=pltpu.PrefetchScalarGridSpec(
            num_scalar_prefetch=0,
            grid=grid,
            in_specs=[
                # per (batch, C-tile, time-tile) block of all N inputs
                pl.BlockSpec((1, N, tc, tt), lambda b, c, t: (b, 0, c, t)),
                # weights: only the C-tile index varies -> stays resident across B, T
                pl.BlockSpec((tc, N), lambda b, c, t: (c, 0)),
            ],
            out_specs=pl.BlockSpec((1, tc, tt), lambda b, c, t: (b, c, t)),
        ),
        compiler_params=pltpu.CompilerParams(
            dimension_semantics=("parallel", "parallel", "parallel"),
            vmem_limit_bytes=vmem_limit,
        ),
    )(x, sm_t)

    if pad_T != T:
        out = out[..., :T]
    return out


def weigth1d_reference(xs_stacked, w):
    # Pure-JAX reference matching the PyTorch module.
    sm = jax.nn.softmax(w.astype(jnp.float32), axis=0)        # (N, C)
    return jnp.sum(xs_stacked.astype(jnp.float32) * sm[None, :, :, None], axis=1)


# ------------------------------------------------------------------------------ tests
if __name__ == "__main__":
    key = jax.random.PRNGKey(0)
    kx, kw, kx2, kw2, kx3, kw3 = jax.random.split(key, 6)

    # Case 1: small toy shape consistent with the module (B=2, N=4, C=8, T=16),
    # weights supplied in the raw PyTorch parameter shape (1, N, C, 1).
    B, N, C, T = 2, 4, 8, 16
    xs_stacked = jax.random.normal(kx, (B, N, C, T), dtype=jnp.float32)
    w = 0.1 * jax.random.normal(kw, (1, N, C, 1), dtype=jnp.float32)

    out = jax.block_until_ready(weigth1d_forward(xs_stacked, w))
    ref = weigth1d_reference(xs_stacked, jnp.reshape(w, (N, C)))
    assert out.shape == (B, C, T)
    assert jnp.allclose(out, ref.astype(out.dtype), atol=1e-5, rtol=1e-5), "mismatch (small)"

    # Case 2: lane-aligned T exercising the tiled (multi-step) pipeline path.
    B2, N2, C2, T2 = 2, 3, 8, 256
    xs2 = jax.random.normal(kx2, (B2, N2, C2, T2), dtype=jnp.float32)
    w2 = 0.1 * jax.random.normal(kw2, (N2, C2), dtype=jnp.float32)

    out2 = jax.block_until_ready(weigth1d_forward(xs2, w2, time_tile=128))
    ref2 = weigth1d_reference(xs2, w2)
    assert out2.shape == (B2, C2, T2)
    assert jnp.allclose(out2, ref2.astype(out2.dtype), atol=1e-5, rtol=1e-5), "mismatch (tiled)"

    # Case 3: unaligned T with a tiny budget -> exercises the pad-to-128 + slice path
    # and the >=2-grid-steps guarantee (B=1).
    B3, N3, C3, T3 = 1, 2, 16, 300
    xs3 = jax.random.normal(kx3, (B3, N3, C3, T3), dtype=jnp.float32)
    w3 = 0.1 * jax.random.normal(kw3, (N3, C3), dtype=jnp.float32)

    out3 = jax.block_until_ready(weigth1d_forward(xs3, w3, vmem_budget_bytes=64 * 1024))
    ref3 = weigth1d_reference(xs3, w3)
    assert out3.shape == (B3, C3, T3)
    assert jnp.allclose(out3, ref3.astype(out3.dtype), atol=1e-5, rtol=1e-5), "mismatch (padded)"

    print("KERNEL_OK")
</pallas_src>

<mosaic_0001>
module attributes {stable_mosaic.version = 11 : i64} {
  func.func @_weigth1d_kernel(%arg0: i32, %arg1: i32, %arg2: i32, %arg3: memref<1x4x8x16xf32, #tpu.memory_space<vmem>>, %arg4: memref<8x4xf32, #tpu.memory_space<vmem>>, %arg5: memref<1x8x16xf32, #tpu.memory_space<vmem>>) attributes {dimension_semantics = [#tpu.dimension_semantics<parallel>, #tpu.dimension_semantics<parallel>, #tpu.dimension_semantics<parallel>], iteration_bounds = array<i64: 2, 1, 1>, scalar_prefetch = 0 : i64, scratch_operands = 0 : i64, tpu.core_type = #tpu.core_type<tc>, window_params = [{transform_indices = @transform_0, window_bounds = array<i64: 1, 4, 8, 16>}, {transform_indices = @transform_1, window_bounds = array<i64: 8, 4>}, {transform_indices = @transform_2, window_bounds = array<i64: 1, 8, 16>}]} {
    %c0 = arith.constant 0 : index
    %c0_0 = arith.constant 0 : index
    %0 = vector.load %arg4[%c0, %c0_0] : memref<8x4xf32, #tpu.memory_space<vmem>>, vector<8x4xf32>
    %c0_1 = arith.constant 0 : index
    %c0_2 = arith.constant 0 : index
    %c0_3 = arith.constant 0 : index
    %c0_4 = arith.constant 0 : index
    %1 = vector.load %arg3[%c0_1, %c0_2, %c0_3, %c0_4] : memref<1x4x8x16xf32, #tpu.memory_space<vmem>>, vector<1x1x8x16xf32>
    %2 = vector.shape_cast %1 : vector<1x1x8x16xf32> to vector<8x16xf32>
    %3 = vector.extract_strided_slice %0 {offsets = [0, 0], sizes = [8, 1], strides = [1, 1]} : vector<8x4xf32> to vector<8x1xf32>
    %4 = vector.broadcast %3 : vector<8x1xf32> to vector<8x16xf32>
    %5 = arith.mulf %2, %4 : vector<8x16xf32>
    %c0_5 = arith.constant 0 : index
    %c1 = arith.constant 1 : index
    %c0_6 = arith.constant 0 : index
    %c0_7 = arith.constant 0 : index
    %6 = vector.load %arg3[%c0_5, %c1, %c0_6, %c0_7] : memref<1x4x8x16xf32, #tpu.memory_space<vmem>>, vector<1x1x8x16xf32>
    %7 = vector.shape_cast %6 : vector<1x1x8x16xf32> to vector<8x16xf32>
    %8 = vector.extract_strided_slice %0 {offsets = [0, 1], sizes = [8, 1], strides = [1, 1]} : vector<8x4xf32> to vector<8x1xf32>
    %9 = vector.broadcast %8 : vector<8x1xf32> to vector<8x16xf32>
    %10 = arith.mulf %7, %9 : vector<8x16xf32>
    %11 = arith.addf %5, %10 : vector<8x16xf32>
    %c0_8 = arith.constant 0 : index
    %c2 = arith.constant 2 : index
    %c0_9 = arith.constant 0 : index
    %c0_10 = arith.constant 0 : index
    %12 = vector.load %arg3[%c0_8, %c2, %c0_9, %c0_10] : memref<1x4x8x16xf32, #tpu.memory_space<vmem>>, vector<1x1x8x16xf32>
    %13 = vector.shape_cast %12 : vector<1x1x8x16xf32> to vector<8x16xf32>
    %14 = vector.extract_strided_slice %0 {offsets = [0, 2], sizes = [8, 1], strides = [1, 1]} : vector<8x4xf32> to vector<8x1xf32>
    %15 = vector.broadcast %14 : vector<8x1xf32> to vector<8x16xf32>
    %16 = arith.mulf %13, %15 : vector<8x16xf32>
    %17 = arith.addf %11, %16 : vector<8x16xf32>
    %c0_11 = arith.constant 0 : index
    %c3 = arith.constant 3 : index
    %c0_12 = arith.constant 0 : index
    %c0_13 = arith.constant 0 : index
    %18 = vector.load %arg3[%c0_11, %c3, %c0_12, %c0_13] : memref<1x4x8x16xf32, #tpu.memory_space<vmem>>, vector<1x1x8x16xf32>
    %19 = vector.shape_cast %18 : vector<1x1x8x16xf32> to vector<8x16xf32>
    %20 = vector.extract_strided_slice %0 {offsets = [0, 3], sizes = [8, 1], strides = [1, 1]} : vector<8x4xf32> to vector<8x1xf32>
    %21 = vector.broadcast %20 : vector<8x1xf32> to vector<8x16xf32>
    %22 = arith.mulf %19, %21 : vector<8x16xf32>
    %23 = arith.addf %17, %22 : vector<8x16xf32>
    %24 = vector.shape_cast %23 : vector<8x16xf32> to vector<1x8x16xf32>
    %c0_14 = arith.constant 0 : index
    %c0_15 = arith.constant 0 : index
    %c0_16 = arith.constant 0 : index
    %25 = vector.load %arg5[%c0_14, %c0_15, %c0_16] : memref<1x8x16xf32, #tpu.memory_space<vmem>>, vector<1x8x16xf32>
    tpu.vector_store %arg5[%c0_14, %c0_15, %c0_16], %24 {strides = array<i32>} : memref<1x8x16xf32, #tpu.memory_space<vmem>>, vector<1x8x16xf32>,
    return
  }
  func.func @transform_0(%arg0: i32, %arg1: i32, %arg2: i32) -> (i32, i32, i32, i32) {
    %c0_i32 = arith.constant 0 : i32
    %c0_i32_0 = arith.constant 0 : i32
    return %arg0, %c0_i32, %arg1, %arg2 : i32, i32, i32, i32
  }
  func.func @transform_1(%arg0: i32, %arg1: i32, %arg2: i32) -> (i32, i32) {
    %c0_i32 = arith.constant 0 : i32
    %c0_i32_0 = arith.constant 0 : i32
    return %arg1, %c0_i32 : i32, i32
  }
  func.func @transform_2(%arg0: i32, %arg1: i32, %arg2: i32) -> (i32, i32, i32) {
    %c0_i32 = arith.constant 0 : i32
    return %arg0, %arg1, %arg2 : i32, i32, i32
  }
}

</mosaic_0001>

<bundles_post_ra>
// kernel: tpu_custom_call.1
= control target key start
LH: loop header
LB: loop body
LE: loop exit
PB: predicated region body
PF: predicated region fallthrough
CT: control target
= control target key end

     0   :  { %7 = vsyncpa [#allocation3], 0  ;;  %s720_s0 = inlined_call_operand.hbm [shape: f32[2,4,8,16], index: 0, kind: input, shape index: {}]   ;;  %s721_s1 = inlined_call_operand.vmem [shape: f32[8,4], index: 1, kind: input, shape index: {}]   ;;  %s722_s2 = inlined_call_operand.hbm [shape: f32[2,8,16], index: 2, kind: output, shape index: {}]  }
   0x1   :  { %9 = vsyncpa [#allocation3 + $0x1], 0 }
   0x2   :  { %10 = vsyncpa [#allocation4], 0 }
   0x3   :  { %12 = vsyncpa [#allocation4 + $0x1], 0  ;;  %s584_s9 = smov 0   ;;  %s586_s10 = smov 0  }
   0x4   :  { %s588_s11 = smov 0   ;;  %s590_s12 = smov 0  }
   0x5   :  { %s592_s13 = smov 0   ;;  %s594_s14 = smov 0  }
   0x6 LB: > { %s359_s15 = sadd.s32 4294967295, %s559_s14   ;;  %s360_s16 = sadd.s32 4294967294, %s559_s14   ;;  %s559_s14 = sphi %s594_s14, %s18_s14   ;;  %s555_s13 = sphi %s592_s13, %s733_s13   ;;  %s551_s12 = sphi %s590_s12, %s732_s12   ;;  %s547_s11 = sphi %s588_s11, %s731_s11   ;;  %s543_s10 = sphi %s586_s10, %s730_s10   ;;  %s539_s9 = sphi %s584_s9, %s729_s9  }
   0x7   : > { %s37_s17 = sadd.s32 1, %s555_s13  ;;  %s48_s18 = sadd.s32 1, %s547_s11 }
   0x8   : > { %p39_p0 = scmp.ge.s32.totalorder %s37_s17, 2  ;;  %p55_p1 = scmp.ne.s32.totalorder %s547_s11, %s543_s10 }
   0x9   : > { %p56_p2 = scmp.eq.s32.totalorder %s559_s14, 0  ;;  %p61_p3 = scmp.ne.s32.totalorder %s543_s10, %s539_s9 }
   0xa   : > { %s735_s17 = smov (%p39_p0, %s37_s17), 0  ;;  %p62_p5 = scmp.eq.s32.totalorder %s359_s15, 0 }
   0xb   : > { %p625_p4 = por %p56_p2, %p55_p1  ;;  %s41_s20 = ssub.s32 %s555_s13, %s735_s17 }
   0xc   : > { %p115_p6 = scmp.eq.s32.totalorder %s359_s15, 1  ;;  %p46_p7 = scmp.eq.s32.totalorder %s41_s20, 0 }
   0xd   : > { %p631_p8 = por %p62_p5, %p61_p3  ;;  %p121_p10 = scmp.eq.s32.totalorder %s360_s16, 1 }
   0xe   : > { %p635_p9 = por %p115_p6, %p55_p1  ;;  %p390_p13 = scmp.lt.s32.totalorder %s559_s14, 2 }
   0xf   : > { %s640_s23 = scalar_select %p46_p7, %s547_s11, %s48_s18  }
  0x10   : > { %p642_p11 = por %p121_p10, %p61_p3  ;;  %s148_s25 = sand.u32 1, %s547_s11  }
  0x11   : > { %s364_s26 = sshll.u32 %s148_s25, 5  ;;  %s377_s27 = sshll.u32 %s555_s13, 9 }
  0x12   : > { %s160_s30 = scalar_lea.hbm %s720_s0, %s377_s27  ;;  %s152_s3 = scalar_lea.vmem [#allocation2], %s364_s26 }
  0x13   : > { %s161_s4 = sshll.u32 %s152_s3, 4  ;;  %p655_p0 = pnand %p390_p13, %p625_p4  ;;  %s162_s4 = int_to_ptr.vmem [resolvable:$true] %s161_s4 }
  0x14   : > { %p367_p1 = scmp.ge.s32.totalorder %s559_s14, 1  ;;  %s149_s6 = scalar_lea.sflag [#allocation3], %s148_s25 }
  0x15   : > { %p453_p2 = pneg %p655_p0  ;;  %s464_s7 = scalar_lea.vmem %s162_s4, 512 }
  0x16   : > { %p465_p3 = scmp.ne.s32.totalorder %s162_s4, %s464_s7  ;;  %s561_s8 = smov [#allocation2]  }
  0x17   : > { %s469_s15 = sshll.u32 %s561_s8, 4  ;;  %s470_s15 = int_to_ptr.vmem [resolvable:$false] %s469_s15 }
  0x18   : > { %p467_p5 = pnand %p465_p3, %p453_p2  ;;  %s471_s16 = scalar_lea.vmem %s470_s15, 1024 }
  0x19   : > { %p472_p7 = scmp.lt.s32.totalorder %s162_s4, %s470_s15  ;;  %p473_p10 = scmp.lt.s32.totalorder %s471_s16, %s464_s7 }
  0x1a   : > { %p468_p6 = pneg %p467_p5 }
  0x1b   : > { %p474_p12 = por %p473_p10, %p472_p7 }
  0x1d   : > { %p475_p4 = pnand %p474_p12, %p468_p6 }
  0x1f   : > { %478 = shalt.err (!%p475_p4)
}
  0x20   : > { %s562_s18 = smov 128   ;;  %s563_s19 = smov 8  }
  0x21   : > { %385 = dma.hbm_to_vmem [thread:$0]  (!%p655_p0), %s160_s30, 512, %s162_s4, %s149_s6, %s562_s18, %s562_s18, %s563_s19  }
  0x22   : > { %p169_p13 = scmp.lt.s32.totalorder %s559_s14, 3 }
  0x24   : > { %p170_p2 = pnand %p367_p1, %p169_p13 }
  0x25   : > { %s668_s20 = sand.u32 (!%p170_p2), 1, %s543_s10  }
  0x26   : > { %173 = sbr.rel (%p170_p2) target bundleno = 196 (0xc4), region = 28  ;;  %s368_s25 = sshll.u32 (!%p170_p2), %s668_s20, 5 }
  0x27   : > { %s176_s26 = scalar_lea.sflag (!%p170_p2), [#allocation3], %s668_s20  ;;  %s179_s27 = scalar_lea.vmem (!%p170_p2), [#allocation2], %s368_s25 }
  0x2b   : > { %530 = dma.done.wait (%p631_p8), %s176_s26, 512  }
  0x2c   : > { %532 = vsyncadd (%p631_p8), %s176_s26, 4294966784  ;;  %v564_v0 = vmov 0   ;;  %v565_v1 = vmov 2   ;;  %v208_v2 = vld [vmem:[%s721_s1] sm:$0xff]  ;;  %v566_v3 = vmov 1   ;;  %v567_v4 = vmov 3  }
  0x2d   : > { %446 = vset.pattern.permute.xlu0 %v564_v0  ;;  %448 = vset.pattern.permute.xlu1 %v565_v1  ;;  %v209_v7 = vld [vmem:[%s179_s27] sm:$0xff]  ;;  %v370_v8 = vld [vmem:[%s179_s27 + $0x8] sm:$0xff]  ;;  %s369_s21 = sshll.u32 %s668_s20, 3  ;;  %v371_v9 = vld [vmem:[%s179_s27 + $0x10] sm:$0xff]  ;;  %s374_s30 = sshll.u32 %s551_s12, 7  ;;  %vm240_vm0 = vcmask 130048  }
  0x2e   : > { %212 = vperm.xlu0 %446, %v208_v2   ;;  %227 = vperm.xlu1 %448, %v208_v2   ;;  %v372_v11 = vld [vmem:[%s179_s27 + $0x18] sm:$0xff]  ;;  %s203_s3 = scalar_lea.vmem [#allocation5], %s369_s21  ;;  %s256_s7 = scalar_lea.hbm %s722_s2, %s374_s30 }
  0x2f   : > { %s258_s4 = sshll.u32 %s203_s3, 4  ;;  %s243_s8 = scalar_lea.sflag [#allocation4], %s668_s20  ;;  %s259_s4 = int_to_ptr.vmem [resolvable:$true] %s258_s4 }
  0x30   : > { %s479_s15 = scalar_lea.vmem %s259_s4, 128  ;;  %s568_s16 = smov [#allocation5]  }
  0x31   : > { %p480_p8 = scmp.ne.s32.totalorder %s259_s4, %s479_s15  ;;  %s483_s18 = sshll.u32 %s568_s16, 4  ;;  %s484_s18 = int_to_ptr.vmem [resolvable:$false] %s483_s18 }
  0x32   : > { %447 = vset.pattern.permute.xlu0 %v566_v3  ;;  %449 = vset.pattern.permute.xlu1 %v567_v4  ;;  %s485_s12 = scalar_lea.vmem %s484_s18, 256  ;;  %p486_p1 = scmp.lt.s32.totalorder %s259_s4, %s484_s18 }
  0x33   : > { %219 = vperm.xlu0 %447, %v208_v2   ;;  %235 = vperm.xlu1 %449, %v208_v2   ;;  %p481_p12 = pnand %p480_p8, %p635_p9  ;;  %p487_p3 = scmp.lt.s32.totalorder %s485_s12, %s479_s15 }
  0x35   : > { %p482_p0 = pneg %p481_p12  ;;  %p488_p5 = por %p487_p3, %p486_p1 }
  0x37   : > { %450 = vset.pattern.permute.xlu0 %v567_v4  ;;  %p489_p6 = pnand %p488_p5, %p482_p0 }
  0xa9   : > { %v213_v5 = vpop.permute.xlu0 %212  ;;  %v228_v6 = vpop.permute.xlu1 %227 }
  0xaa   : > { %v215_v13 = vmul.f32 %v213_v5, %v209_v7  ;;  %v230_v15 = vmul.f32 %v371_v9, %v228_v6 }
  0xae   : > { %v220_v10 = vpop.permute.xlu0 %219  ;;  %v236_v12 = vpop.permute.xlu1 %235 }
  0xaf   : > { %v222_v14 = vmul.f32 %v370_v8, %v220_v10  ;;  %v238_v17 = vmul.f32 %v372_v11, %v236_v12 }
  0xb1   : > { %v223_v16 = vadd.f32 %v222_v14, %v215_v13 }
  0xb3   : > { %v231_v18 = vadd.f32 %v230_v15, %v223_v16 }
  0xb5   : > { %v239_v19 = vadd.f32 %v238_v17, %v231_v18 }
  0xb7   : > { %241 = vst.msk [vmem:[%s203_s3] sm:$0xff] %vm240_vm0, %v239_v19 }
  0xb8   : > { %492 = shalt.err (!%p489_p6)
}
  0xb9   : > { %s493_s19 = scalar_lea.hbm %s256_s7, 128  ;;  %s497_s26 = scalar_lea.hbm %s722_s2, 256 }
  0xba   : > { %p494_p7 = scmp.ne.s32.totalorder %s256_s7, %s493_s19  ;;  %p498_p13 = scmp.lt.s32.totalorder %s256_s7, %s722_s2 }
  0xbb   : > { %p499_p2 = scmp.lt.s32.totalorder %s497_s26, %s493_s19 }
  0xbc   : > { %p495_p10 = pnand %p494_p7, %p635_p9 }
  0xbd   : > { %p500_p8 = por %p499_p2, %p498_p13 }
  0xbe   : > { %p496_p4 = pneg %p495_p10 }
  0xc0   : > { %p501_p12 = pnand %p500_p8, %p496_p4 }
  0xc2   : > { %504 = shalt.err (!%p501_p12)
}
  0xc3   : > { %380 = dma.vmem_to_hbm [thread:$0]  (%p635_p9), %s259_s4, 128, %s256_s7, %s243_s8  }
  0xc4 PF: > { %s270_s29 = sand.u32 1, %s539_s9   ;;  %p728_p0 = scmp.ge.s32.totalorder %s559_s14, 2 }
  0xc5   : > { %s271_s21 = scalar_lea.sflag [#allocation4], %s270_s29 }
  0xc6   : > { %p387_p1 = pnand %p728_p0, %p642_p11 }
  0xc8   : > { %p388_p3 = pneg %p387_p1 }
  0xca   : > { %534 = dma.done.wait (%p388_p3), %s271_s21, 128  }
  0xcb   : > { %536 = vsyncadd (%p388_p3), %s271_s21, 4294967168  ;;  %s18_s14 = sadd.s32 1, %s559_s14   ;;  %s729_s9 = smov %s543_s10 }
  0xcc   : > { %p15_p5 = scmp.ge.s32.totalorder %s18_s14, 4   ;;  %s730_s10 = smov %s547_s11 }
  0xcd   : > { %s731_s11 = smov %s640_s23  ;;  %s732_s12 = smov %s555_s13 }
  0xce   : > { %s733_s13 = smov %s735_s17  ;;  %17 = sbr.rel (!%p15_p5) target bundleno = 6 (0x6), region = 79 }
  0xd3   :  { %276 = vsyncpa [#allocation3], 1 }
  0xd4   :  { %278 = vsyncpa [#allocation3 + $0x1], 1 }
  0xd5   :  { %279 = vsyncpa [#allocation4], 1 }
  0xd6   :  { %281 = vsyncpa [#allocation4 + $0x1], 1 }

</bundles_post_ra>
